<compile_context>
chip_gen: v7x
topology: tpu7x:2x2x1
jax: 0.10.0
libtpu: 0.0.40
codegen_flags: <defaults>
</compile_context>

<pallas_src>
import jax
import jax.numpy as jnp
from jax import lax
from jax.experimental import pallas as pl
from jax.experimental.pallas import tpu as pltpu


def birnn_last_state_kernel(x_ref, wih_f_ref, wih_b_ref, whh_ref,
                            b_f_ref, b_b_ref, wfc_f_ref, wfc_b_ref, bfc_ref,
                            out_ref):
    """Bidirectional vanilla-RNN + last_state pooling + Linear(., 1) + sigmoid.

    x_ref:     (T, TB, E)  bf16 time-major embedded tokens (one batch tile)
    wih_f_ref: (E, H)      bf16 Wih_fwd^T
    wih_b_ref: (E, H)      bf16 Wih_bwd^T
    whh_ref:   (H, H)      bf16 Whh_fwd^T
    b_f_ref:   (1, H)      f32  b_ih_f + b_hh_f
    b_b_ref:   (1, H)      f32  b_ih_b + b_hh_b
    wfc_f_ref: (1, H)      f32  fc weight, forward half
    wfc_b_ref: (1, H)      f32  fc weight, backward half
    bfc_ref:   (1, 1)      f32  fc bias
    out_ref:   (1, 1, TB)  f32  sigmoid(fc([h_fwd_last | h_bwd_at_T]))  (lane-dense)
    """
    T, TB, E = x_ref.shape
    H = whh_ref.shape[0]

    # ---- hoisted FORWARD-only input projection: one big bf16 MXU matmul --------
    # TODO(synk): for very large T*E, chunk this projection over T (nested
    # emit_pipeline / extra 'arbitrary' grid axis) to respect v7x's 64 MiB VMEM.
    x_flat = x_ref[...].reshape(T * TB, E)                              # bf16
    proj_f = jnp.dot(x_flat, wih_f_ref[...],
                     preferred_element_type=jnp.float32)                # (T*TB, H) f32
    proj_f = (proj_f + b_f_ref[...]).reshape(T, TB, H)                  # (T, TB, H)

    whh = whh_ref[...]                                                  # (H, H) bf16

    # ---- forward recurrence: h_t = tanh(proj_f[t] + h_{t-1} @ Whh_f) -----------
    # h0 == 0, so step 0 is just tanh(proj_f[0]) (no matmul).
    h = jnp.tanh(proj_f[0])                                             # (TB, H) f32
    if T <= 16:
        # small static T: fully unrolled so LLO overlaps tanh(EUP)/add(VPU)/MXU push
        for t in range(1, T):
            h = jnp.tanh(proj_f[t] +
                         jnp.dot(h.astype(jnp.bfloat16), whh,
                                 preferred_element_type=jnp.float32))
    else:
        # large T: bound vreg live ranges with a modestly unrolled fori_loop
        def body(t, h_carry):
            p_t = lax.dynamic_index_in_dim(proj_f, t, axis=0, keepdims=False)
            return jnp.tanh(p_t +
                            jnp.dot(h_carry.astype(jnp.bfloat16), whh,
                                    preferred_element_type=jnp.float32))
        h = lax.fori_loop(1, T, body, h, unroll=4)

    # ---- backward direction (exact shortcut) ------------------------------------
    # rnn_output[:, -1, H:] is the backward RNN's hidden at time T-1, i.e. its FIRST
    # step with h0 == 0  ->  tanh(x[T-1] @ Wih_b^T + b_ih_b + b_hh_b).
    h_bwd = jnp.tanh(jnp.dot(x_ref[T - 1], wih_b_ref[...],
                             preferred_element_type=jnp.float32) + b_b_ref[...])

    # ---- last_state pooling + fc + sigmoid (dropout = identity in eval) ---------
    # fc as VPU multiply + lane reduce (avoids an N=1 MXU matvec / full MXU drain).
    contrib = h * wfc_f_ref[...] + h_bwd * wfc_b_ref[...]               # (TB, H) f32
    logits = jnp.sum(contrib, axis=-1)                                  # (TB,)
    probs = jax.nn.sigmoid(logits + bfc_ref[...])                       # (1, TB)
    out_ref[...] = probs.reshape(1, 1, TB)                              # lane-dense


def _round_up(x, m):
    return ((x + m - 1) // m) * m


def rnn_model_forward(token_ids, params):
    """Equivalent of RNNModel.forward (rnn_type='rnn', bidirectional=True,
    num_layers=1, pooling='last_state', eval mode)."""
    # Embedding lookup (plain-JAX gather) directly time-major and already bf16
    # (table stored bf16), so no extra transpose/cast pass over the activation.
    # TODO(synk): fuse the gather itself into the kernel via PrefetchScalarGridSpec
    # scalar-prefetched token ids + pl.Element row gather on the embedding table.
    emb_tbe = jnp.take(params["embedding_bf16"], token_ids.T, axis=0)   # (T, B, E) bf16

    T, B, E = emb_tbe.shape
    H = params["whh_f_T"].shape[0]

    # Batch tiling: aim for >= 2 tiles (megacore on v7x), TB up to 256 for large B.
    TB = min(256, _round_up(max(pl.cdiv(B, 2), 1), 8))
    n_btiles = max(pl.cdiv(B, TB), 2) if B >= 2 else 1
    B_pad = n_btiles * TB
    if B_pad != B:
        emb_tbe = jnp.pad(emb_tbe, ((0, 0), (0, B_pad - B), (0, 0)))

    wih_f = params["wih_f_T"]     # (E, H) bf16
    wih_b = params["wih_b_T"]     # (E, H) bf16
    whh = params["whh_f_T"]       # (H, H) bf16
    b_f = params["b_f"]           # (1, H) f32
    b_b = params["b_b"]           # (1, H) f32
    wfc_f = params["wfc_f"]       # (1, H) f32
    wfc_b = params["wfc_b"]       # (1, H) f32
    bfc = params["bfc"]           # (1, 1) f32

    # Explicit VMEM budget (double-buffered x tile + f32 proj_f + weights + slack),
    # floored at the smallest default (16 MiB) and capped below v7x's 64 MiB.
    bytes_x = T * TB * E * 2
    bytes_proj = T * TB * H * 4
    bytes_w = (2 * E * H + H * H) * 2 + (4 * H + 1) * 4
    est = 2 * bytes_x + bytes_proj + bytes_w + 8 * TB * H * 4
    vmem_limit = int(min(48 * 1024 * 1024, max(2 * est, 16 * 1024 * 1024)))

    out3 = pl.pallas_call(
        birnn_last_state_kernel,
        out_shape=jax.ShapeDtypeStruct((n_btiles, 1, TB), jnp.float32),
        grid=(n_btiles,),
        in_specs=[
            # input: one batch tile per grid step
            pl.BlockSpec((T, TB, E), lambda i: (0, i, 0)),
            # weights: constant index_map -> stay resident in VMEM across steps
            pl.BlockSpec(wih_f.shape, lambda i: (0, 0)),
            pl.BlockSpec(wih_b.shape, lambda i: (0, 0)),
            pl.BlockSpec(whh.shape, lambda i: (0, 0)),
            pl.BlockSpec(b_f.shape, lambda i: (0, 0)),
            pl.BlockSpec(b_b.shape, lambda i: (0, 0)),
            pl.BlockSpec(wfc_f.shape, lambda i: (0, 0)),
            pl.BlockSpec(wfc_b.shape, lambda i: (0, 0)),
            pl.BlockSpec(bfc.shape, lambda i: (0, 0)),
        ],
        # lane-dense output: one (1, 1, TB) row block per grid step
        out_specs=pl.BlockSpec((1, 1, TB), lambda i: (i, 0, 0)),
        compiler_params=pltpu.CompilerParams(
            dimension_semantics=("parallel",),     # megacore over batch tiles (v7x)
            vmem_limit_bytes=vmem_limit),
    )(emb_tbe, wih_f, wih_b, whh, b_f, b_b, wfc_f, wfc_b, bfc)

    return out3.reshape(B_pad)[:B].reshape(B, 1)                        # (B, 1) f32


def rnn_model_reference(token_ids, params):
    """Pure-JAX f32 reference of RNNModel.forward (eval mode) for tolerance checks."""
    p = params["raw"]
    emb = jnp.take(params["embedding"], token_ids, axis=0)              # (B, T, E) f32
    B, T, _ = emb.shape
    H = p["whh_f"].shape[0]

    h = jnp.zeros((B, H), jnp.float32)
    for t in range(T):
        h = jnp.tanh(emb[:, t] @ p["wih_f"].T + p["b_ih_f"]
                     + h @ p["whh_f"].T + p["b_hh_f"])
    h_fwd_last = h
    # rnn_output[:, -1, H:] == backward direction's first step (h0 = 0):
    h_bwd_last = jnp.tanh(emb[:, T - 1] @ p["wih_b"].T + p["b_ih_b"] + p["b_hh_b"])
    rep = jnp.concatenate([h_fwd_last, h_bwd_last], axis=1)
    return jax.nn.sigmoid(rep @ p["wfc"].T + p["bfc"])                  # (B, 1)


def init_params(key, vocab_size, embedding_dim, hidden_size):
    """Deterministic synthetic parameters matching the PyTorch module shapes."""
    ks = jax.random.split(key, 11)
    k_rnn = 1.0 / (hidden_size ** 0.5)
    k_fc = 1.0 / ((2 * hidden_size) ** 0.5)
    H = hidden_size

    def unif(k, shape, scale):
        return jax.random.uniform(k, shape, jnp.float32, -scale, scale)

    embedding = jax.random.normal(ks[0], (vocab_size, embedding_dim), jnp.float32)

    # nn.RNN weights: weight_ih (H, E), weight_hh (H, H), biases (H,) per direction.
    wih_f = unif(ks[1], (H, embedding_dim), k_rnn)
    whh_f = unif(ks[2], (H, H), k_rnn)
    b_ih_f = unif(ks[3], (H,), k_rnn)
    b_hh_f = unif(ks[4], (H,), k_rnn)
    wih_b = unif(ks[5], (H, embedding_dim), k_rnn)
    whh_b = unif(ks[6], (H, H), k_rnn)   # never influences rnn_output[:, -1, :] (h0=0)
    b_ih_b = unif(ks[7], (H,), k_rnn)
    b_hh_b = unif(ks[8], (H,), k_rnn)

    # nn.Linear(hidden*2, 1): weight (1, 2H), bias (1,)
    wfc = unif(ks[9], (1, 2 * H), k_fc)
    bfc = unif(ks[10], (1,), k_fc)

    return dict(
        # full-precision copies (reference / faithful module parameters)
        embedding=embedding,
        raw=dict(wih_f=wih_f, whh_f=whh_f, b_ih_f=b_ih_f, b_hh_f=b_hh_f,
                 wih_b=wih_b, whh_b=whh_b, b_ih_b=b_ih_b, b_hh_b=b_hh_b,
                 wfc=wfc, bfc=bfc),
        # kernel-side tensors
        embedding_bf16=embedding.astype(jnp.bfloat16),
        wih_f_T=wih_f.T.astype(jnp.bfloat16),                            # (E, H)
        wih_b_T=wih_b.T.astype(jnp.bfloat16),                            # (E, H)
        whh_f_T=whh_f.T.astype(jnp.bfloat16),                            # (H, H)
        b_f=(b_ih_f + b_hh_f).reshape(1, H),                             # (1, H)
        b_b=(b_ih_b + b_hh_b).reshape(1, H),                             # (1, H)
        wfc_f=wfc[:, :H],                                                # (1, H)
        wfc_b=wfc[:, H:],                                                # (1, H)
        bfc=bfc.reshape(1, 1),                                           # (1, 1)
    )


if __name__ == "__main__":
    VOCAB, E, H = 50, 32, 32
    B, T = 2, 8

    key = jax.random.PRNGKey(0)
    k_tok, k_par = jax.random.split(key)
    params = init_params(k_par, VOCAB, E, H)
    token_ids = jax.random.randint(k_tok, (B, T), 0, VOCAB, dtype=jnp.int32)

    out = rnn_model_forward(token_ids, params)
    out = jax.block_until_ready(out)

    ref = rnn_model_reference(token_ids, params)
    assert out.shape == (B, 1)
    assert bool(jnp.all(jnp.isfinite(out)))
    assert bool(jnp.all((out >= 0.0) & (out <= 1.0)))
    # bf16 inputs/weights on the MXU vs f32 reference: allow a loose tolerance.
    assert bool(jnp.max(jnp.abs(out - ref)) < 5e-2), (out, ref)
    print("KERNEL_OK")
</pallas_src>

<mosaic_0001>
module attributes {stable_mosaic.version = 11 : i64} {
  func.func @birnn_last_state_kernel(%arg0: i32, %arg1: memref<8x8x32xbf16, #tpu.memory_space<vmem>>, %arg2: memref<32x32xbf16, #tpu.memory_space<vmem>>, %arg3: memref<32x32xbf16, #tpu.memory_space<vmem>>, %arg4: memref<32x32xbf16, #tpu.memory_space<vmem>>, %arg5: memref<1x32xf32, #tpu.memory_space<vmem>>, %arg6: memref<1x32xf32, #tpu.memory_space<vmem>>, %arg7: memref<1x32xf32, #tpu.memory_space<vmem>>, %arg8: memref<1x32xf32, #tpu.memory_space<vmem>>, %arg9: memref<1x1xf32, #tpu.memory_space<vmem>>, %arg10: memref<1x1x8xf32, #tpu.memory_space<vmem>>) attributes {dimension_semantics = [#tpu.dimension_semantics<parallel>], iteration_bounds = array<i64: 2>, scalar_prefetch = 0 : i64, scratch_operands = 0 : i64, tpu.core_type = #tpu.core_type<tc>, window_params = [{transform_indices = @transform_0, window_bounds = array<i64: 8, 8, 32>}, {pipeline_mode = #tpu.pipeline_mode<synchronous>, transform_indices = @transform_1, window_bounds = array<i64: 32, 32>}, {pipeline_mode = #tpu.pipeline_mode<synchronous>, transform_indices = @transform_2, window_bounds = array<i64: 32, 32>}, {pipeline_mode = #tpu.pipeline_mode<synchronous>, transform_indices = @transform_3, window_bounds = array<i64: 32, 32>}, {pipeline_mode = #tpu.pipeline_mode<synchronous>, transform_indices = @transform_4, window_bounds = array<i64: 1, 32>}, {pipeline_mode = #tpu.pipeline_mode<synchronous>, transform_indices = @transform_5, window_bounds = array<i64: 1, 32>}, {pipeline_mode = #tpu.pipeline_mode<synchronous>, transform_indices = @transform_6, window_bounds = array<i64: 1, 32>}, {pipeline_mode = #tpu.pipeline_mode<synchronous>, transform_indices = @transform_7, window_bounds = array<i64: 1, 32>}, {pipeline_mode = #tpu.pipeline_mode<synchronous>, transform_indices = @transform_8, window_bounds = array<i64: 1, 1>}, {transform_indices = @transform_9, window_bounds = array<i64: 1, 1, 8>}]} {
    %c0 = arith.constant 0 : index
    %c0_0 = arith.constant 0 : index
    %c0_1 = arith.constant 0 : index
    %0 = vector.load %arg1[%c0, %c0_0, %c0_1] : memref<8x8x32xbf16, #tpu.memory_space<vmem>>, vector<8x8x32xbf16>
    %1 = vector.shape_cast %0 : vector<8x8x32xbf16> to vector<64x32xbf16>
    %c0_2 = arith.constant 0 : index
    %c0_3 = arith.constant 0 : index
    %2 = vector.load %arg2[%c0_2, %c0_3] : memref<32x32xbf16, #tpu.memory_space<vmem>>, vector<32x32xbf16>
    %cst = arith.constant dense<0.000000e+00> : vector<64x32xf32>
    %3 = tpu.matmul %1, %2, %cst {dimension_numbers = #tpu.dot_dimension_numbers<[1], [0], [0], [1], [0, 0, 1, 1], [], []>} : vector<64x32xbf16>, vector<32x32xbf16>, vector<64x32xf32> -> vector<64x32xf32>
    %c0_4 = arith.constant 0 : index
    %c0_5 = arith.constant 0 : index
    %4 = vector.load %arg5[%c0_4, %c0_5] : memref<1x32xf32, #tpu.memory_space<vmem>>, vector<1x32xf32>
    %5 = vector.broadcast %4 : vector<1x32xf32> to vector<64x32xf32>
    %6 = arith.addf %3, %5 : vector<64x32xf32>
    %7 = vector.shape_cast %6 : vector<64x32xf32> to vector<8x8x32xf32>
    %c0_6 = arith.constant 0 : index
    %c0_7 = arith.constant 0 : index
    %8 = vector.load %arg4[%c0_6, %c0_7] : memref<32x32xbf16, #tpu.memory_space<vmem>>, vector<32x32xbf16>
    %9 = vector.extract_strided_slice %7 {offsets = [0, 0, 0], sizes = [1, 8, 32], strides = [1, 1, 1]} : vector<8x8x32xf32> to vector<1x8x32xf32>
    %10 = vector.shape_cast %9 : vector<1x8x32xf32> to vector<8x32xf32>
    %11 = math.tanh %10 : vector<8x32xf32>
    %12 = vector.extract_strided_slice %7 {offsets = [1, 0, 0], sizes = [1, 8, 32], strides = [1, 1, 1]} : vector<8x8x32xf32> to vector<1x8x32xf32>
    %13 = vector.shape_cast %12 : vector<1x8x32xf32> to vector<8x32xf32>
    %14 = arith.truncf %11 : vector<8x32xf32> to vector<8x32xbf16>
    %cst_8 = arith.constant dense<0.000000e+00> : vector<8x32xf32>
    %15 = tpu.matmul %14, %8, %cst_8 {dimension_numbers = #tpu.dot_dimension_numbers<[1], [0], [0], [1], [0, 0, 1, 1], [], []>} : vector<8x32xbf16>, vector<32x32xbf16>, vector<8x32xf32> -> vector<8x32xf32>
    %16 = arith.addf %13, %15 : vector<8x32xf32>
    %17 = math.tanh %16 : vector<8x32xf32>
    %18 = vector.extract_strided_slice %7 {offsets = [2, 0, 0], sizes = [1, 8, 32], strides = [1, 1, 1]} : vector<8x8x32xf32> to vector<1x8x32xf32>
    %19 = vector.shape_cast %18 : vector<1x8x32xf32> to vector<8x32xf32>
    %20 = arith.truncf %17 : vector<8x32xf32> to vector<8x32xbf16>
    %cst_9 = arith.constant dense<0.000000e+00> : vector<8x32xf32>
    %21 = tpu.matmul %20, %8, %cst_9 {dimension_numbers = #tpu.dot_dimension_numbers<[1], [0], [0], [1], [0, 0, 1, 1], [], []>} : vector<8x32xbf16>, vector<32x32xbf16>, vector<8x32xf32> -> vector<8x32xf32>
    %22 = arith.addf %19, %21 : vector<8x32xf32>
    %23 = math.tanh %22 : vector<8x32xf32>
    %24 = vector.extract_strided_slice %7 {offsets = [3, 0, 0], sizes = [1, 8, 32], strides = [1, 1, 1]} : vector<8x8x32xf32> to vector<1x8x32xf32>
    %25 = vector.shape_cast %24 : vector<1x8x32xf32> to vector<8x32xf32>
    %26 = arith.truncf %23 : vector<8x32xf32> to vector<8x32xbf16>
    %cst_10 = arith.constant dense<0.000000e+00> : vector<8x32xf32>
    %27 = tpu.matmul %26, %8, %cst_10 {dimension_numbers = #tpu.dot_dimension_numbers<[1], [0], [0], [1], [0, 0, 1, 1], [], []>} : vector<8x32xbf16>, vector<32x32xbf16>, vector<8x32xf32> -> vector<8x32xf32>
    %28 = arith.addf %25, %27 : vector<8x32xf32>
    %29 = math.tanh %28 : vector<8x32xf32>
    %30 = vector.extract_strided_slice %7 {offsets = [4, 0, 0], sizes = [1, 8, 32], strides = [1, 1, 1]} : vector<8x8x32xf32> to vector<1x8x32xf32>
    %31 = vector.shape_cast %30 : vector<1x8x32xf32> to vector<8x32xf32>
    %32 = arith.truncf %29 : vector<8x32xf32> to vector<8x32xbf16>
    %cst_11 = arith.constant dense<0.000000e+00> : vector<8x32xf32>
    %33 = tpu.matmul %32, %8, %cst_11 {dimension_numbers = #tpu.dot_dimension_numbers<[1], [0], [0], [1], [0, 0, 1, 1], [], []>} : vector<8x32xbf16>, vector<32x32xbf16>, vector<8x32xf32> -> vector<8x32xf32>
    %34 = arith.addf %31, %33 : vector<8x32xf32>
    %35 = math.tanh %34 : vector<8x32xf32>
    %36 = vector.extract_strided_slice %7 {offsets = [5, 0, 0], sizes = [1, 8, 32], strides = [1, 1, 1]} : vector<8x8x32xf32> to vector<1x8x32xf32>
    %37 = vector.shape_cast %36 : vector<1x8x32xf32> to vector<8x32xf32>
    %38 = arith.truncf %35 : vector<8x32xf32> to vector<8x32xbf16>
    %cst_12 = arith.constant dense<0.000000e+00> : vector<8x32xf32>
    %39 = tpu.matmul %38, %8, %cst_12 {dimension_numbers = #tpu.dot_dimension_numbers<[1], [0], [0], [1], [0, 0, 1, 1], [], []>} : vector<8x32xbf16>, vector<32x32xbf16>, vector<8x32xf32> -> vector<8x32xf32>
    %40 = arith.addf %37, %39 : vector<8x32xf32>
    %41 = math.tanh %40 : vector<8x32xf32>
    %42 = vector.extract_strided_slice %7 {offsets = [6, 0, 0], sizes = [1, 8, 32], strides = [1, 1, 1]} : vector<8x8x32xf32> to vector<1x8x32xf32>
    %43 = vector.shape_cast %42 : vector<1x8x32xf32> to vector<8x32xf32>
    %44 = arith.truncf %41 : vector<8x32xf32> to vector<8x32xbf16>
    %cst_13 = arith.constant dense<0.000000e+00> : vector<8x32xf32>
    %45 = tpu.matmul %44, %8, %cst_13 {dimension_numbers = #tpu.dot_dimension_numbers<[1], [0], [0], [1], [0, 0, 1, 1], [], []>} : vector<8x32xbf16>, vector<32x32xbf16>, vector<8x32xf32> -> vector<8x32xf32>
    %46 = arith.addf %43, %45 : vector<8x32xf32>
    %47 = math.tanh %46 : vector<8x32xf32>
    %48 = vector.extract_strided_slice %7 {offsets = [7, 0, 0], sizes = [1, 8, 32], strides = [1, 1, 1]} : vector<8x8x32xf32> to vector<1x8x32xf32>
    %49 = vector.shape_cast %48 : vector<1x8x32xf32> to vector<8x32xf32>
    %50 = arith.truncf %47 : vector<8x32xf32> to vector<8x32xbf16>
    %cst_14 = arith.constant dense<0.000000e+00> : vector<8x32xf32>
    %51 = tpu.matmul %50, %8, %cst_14 {dimension_numbers = #tpu.dot_dimension_numbers<[1], [0], [0], [1], [0, 0, 1, 1], [], []>} : vector<8x32xbf16>, vector<32x32xbf16>, vector<8x32xf32> -> vector<8x32xf32>
    %52 = arith.addf %49, %51 : vector<8x32xf32>
    %53 = math.tanh %52 : vector<8x32xf32>
    %c7 = arith.constant 7 : index
    %c0_15 = arith.constant 0 : index
    %c0_16 = arith.constant 0 : index
    %54 = vector.load %arg1[%c7, %c0_15, %c0_16] : memref<8x8x32xbf16, #tpu.memory_space<vmem>>, vector<1x8x32xbf16>
    %55 = vector.shape_cast %54 : vector<1x8x32xbf16> to vector<8x32xbf16>
    %c0_17 = arith.constant 0 : index
    %c0_18 = arith.constant 0 : index
    %56 = vector.load %arg3[%c0_17, %c0_18] : memref<32x32xbf16, #tpu.memory_space<vmem>>, vector<32x32xbf16>
    %cst_19 = arith.constant dense<0.000000e+00> : vector<8x32xf32>
    %57 = tpu.matmul %55, %56, %cst_19 {dimension_numbers = #tpu.dot_dimension_numbers<[1], [0], [0], [1], [0, 0, 1, 1], [], []>} : vector<8x32xbf16>, vector<32x32xbf16>, vector<8x32xf32> -> vector<8x32xf32>
    %c0_20 = arith.constant 0 : index
    %c0_21 = arith.constant 0 : index
    %58 = vector.load %arg6[%c0_20, %c0_21] : memref<1x32xf32, #tpu.memory_space<vmem>>, vector<1x32xf32>
    %59 = vector.broadcast %58 : vector<1x32xf32> to vector<8x32xf32>
    %60 = arith.addf %57, %59 : vector<8x32xf32>
    %61 = math.tanh %60 : vector<8x32xf32>
    %c0_22 = arith.constant 0 : index
    %c0_23 = arith.constant 0 : index
    %62 = vector.load %arg7[%c0_22, %c0_23] : memref<1x32xf32, #tpu.memory_space<vmem>>, vector<1x32xf32>
    %63 = vector.broadcast %62 : vector<1x32xf32> to vector<8x32xf32>
    %64 = arith.mulf %53, %63 : vector<8x32xf32>
    %c0_24 = arith.constant 0 : index
    %c0_25 = arith.constant 0 : index
    %65 = vector.load %arg8[%c0_24, %c0_25] : memref<1x32xf32, #tpu.memory_space<vmem>>, vector<1x32xf32>
    %66 = vector.broadcast %65 : vector<1x32xf32> to vector<8x32xf32>
    %67 = arith.mulf %61, %66 : vector<8x32xf32>
    %68 = arith.addf %64, %67 : vector<8x32xf32>
    %cst_26 = arith.constant dense<0.000000e+00> : vector<8xf32>
    %69 = vector.multi_reduction <add>, %68, %cst_26 [1] : vector<8x32xf32> to vector<8xf32>
    %c0_27 = arith.constant 0 : index
    %c0_28 = arith.constant 0 : index
    %70 = vector.load %arg9[%c0_27, %c0_28] : memref<1x1xf32, #tpu.memory_space<vmem>>, vector<1x1xf32>
    %71 = vector.shape_cast %69 : vector<8xf32> to vector<1x8xf32>
    %72 = vector.broadcast %70 : vector<1x1xf32> to vector<1x8xf32>
    %73 = arith.addf %71, %72 : vector<1x8xf32>
    %74 = arith.negf %73 : vector<1x8xf32>
    %75 = math.exp %74 : vector<1x8xf32>
    %cst_29 = arith.constant 1.000000e+00 : f32
    %76 = vector.broadcast %cst_29 : f32 to vector<1x8xf32>
    %77 = arith.addf %76, %75 : vector<1x8xf32>
    %78 = arith.divf %76, %77 : vector<1x8xf32>
    %79 = vector.shape_cast %78 : vector<1x8xf32> to vector<1x1x8xf32>
    %c0_30 = arith.constant 0 : index
    %c0_31 = arith.constant 0 : index
    %c0_32 = arith.constant 0 : index
    %80 = vector.load %arg10[%c0_30, %c0_31, %c0_32] : memref<1x1x8xf32, #tpu.memory_space<vmem>>, vector<1x1x8xf32>
    tpu.vector_store %arg10[%c0_30, %c0_31, %c0_32], %79 {strides = array<i32>} : memref<1x1x8xf32, #tpu.memory_space<vmem>>, vector<1x1x8xf32>,
    return
  }
  func.func @transform_0(%arg0: i32) -> (i32, i32, i32) {
    %c0_i32 = arith.constant 0 : i32
    %c0_i32_0 = arith.constant 0 : i32
    %c0_i32_1 = arith.constant 0 : i32
    return %c0_i32, %arg0, %c0_i32_0 : i32, i32, i32
  }
  func.func @transform_1(%arg0: i32) -> (i32, i32) {
    %c0_i32 = arith.constant 0 : i32
    %c0_i32_0 = arith.constant 0 : i32
    %c0_i32_1 = arith.constant 0 : i32
    return %c0_i32, %c0_i32_0 : i32, i32
  }
  func.func @transform_2(%arg0: i32) -> (i32, i32) {
    %c0_i32 = arith.constant 0 : i32
    %c0_i32_0 = arith.constant 0 : i32
    %c0_i32_1 = arith.constant 0 : i32
    return %c0_i32, %c0_i32_0 : i32, i32
  }
  func.func @transform_3(%arg0: i32) -> (i32, i32) {
    %c0_i32 = arith.constant 0 : i32
    %c0_i32_0 = arith.constant 0 : i32
    %c0_i32_1 = arith.constant 0 : i32
    return %c0_i32, %c0_i32_0 : i32, i32
  }
  func.func @transform_4(%arg0: i32) -> (i32, i32) {
    %c0_i32 = arith.constant 0 : i32
    %c0_i32_0 = arith.constant 0 : i32
    %c0_i32_1 = arith.constant 0 : i32
    return %c0_i32, %c0_i32_0 : i32, i32
  }
  func.func @transform_5(%arg0: i32) -> (i32, i32) {
    %c0_i32 = arith.constant 0 : i32
    %c0_i32_0 = arith.constant 0 : i32
    %c0_i32_1 = arith.constant 0 : i32
    return %c0_i32, %c0_i32_0 : i32, i32
  }
  func.func @transform_6(%arg0: i32) -> (i32, i32) {
    %c0_i32 = arith.constant 0 : i32
    %c0_i32_0 = arith.constant 0 : i32
    %c0_i32_1 = arith.constant 0 : i32
    return %c0_i32, %c0_i32_0 : i32, i32
  }
  func.func @transform_7(%arg0: i32) -> (i32, i32) {
    %c0_i32 = arith.constant 0 : i32
    %c0_i32_0 = arith.constant 0 : i32
    %c0_i32_1 = arith.constant 0 : i32
    return %c0_i32, %c0_i32_0 : i32, i32
  }
  func.func @transform_8(%arg0: i32) -> (i32, i32) {
    %c0_i32 = arith.constant 0 : i32
    %c0_i32_0 = arith.constant 0 : i32
    %c0_i32_1 = arith.constant 0 : i32
    return %c0_i32, %c0_i32_0 : i32, i32
  }
  func.func @transform_9(%arg0: i32) -> (i32, i32, i32) {
    %c0_i32 = arith.constant 0 : i32
    %c0_i32_0 = arith.constant 0 : i32
    %c0_i32_1 = arith.constant 0 : i32
    return %arg0, %c0_i32, %c0_i32_0 : i32, i32, i32
  }
}

</mosaic_0001>

<bundles_post_ra>
// kernel: tpu_custom_call.1
= control target key start
LH: loop header
LB: loop body
LE: loop exit
PB: predicated region body
PF: predicated region fallthrough
CT: control target
= control target key end

     0   :  { %s1961_s0 = inlined_call_operand.hbm [shape: bf16[8,16,32], index: 0, kind: input, shape index: {}]   ;;  %s1962_s1 = inlined_call_operand.hbm [shape: bf16[32,32], index: 1, kind: input, shape index: {}]   ;;  %s1963_s2 = inlined_call_operand.hbm [shape: bf16[32,32], index: 2, kind: input, shape index: {}]   ;;  %s1964_s3 = inlined_call_operand.hbm [shape: bf16[32,32], index: 3, kind: input, shape index: {}]   ;;  %s1965_s4 = inlined_call_operand.vmem [shape: f32[1,32], index: 4, kind: input, shape index: {}]   ;;  %s1966_s5 = inlined_call_operand.vmem [shape: f32[1,32], index: 5, kind: input, shape index: {}]   ;;  %s1967_s6 = inlined_call_operand.vmem [shape: f32[1,32], index: 6, kind: input, shape index: {}]   ;;  %s1968_s7 = inlined_call_operand.vmem [shape: f32[1,32], index: 7, kind: input, shape index: {}]   ;;  %s1969_s8 = inlined_call_operand.<no memory space> [shape: f32[1,1], index: 8, kind: input, shape index: {}]   ;;  %s1970_s9 = inlined_call_operand.hbm [shape: f32[2,1,8], index: 9, kind: output, shape index: {}]  }
   0x1   :  { %1981 = sst [smem:[#allocation20_spill]] %s1962_s1  ;;  %v14_v0 = vstv %s1969_s8 }
   0x2   :  { %1982 = sst [smem:[#allocation21_spill]] %s1970_s9  ;;  %15 = vst [vmem:[#allocation2] sm:$0x1] %v14_v0 }
   0x3   :  { %16 = vsyncpa [#allocation4], 0 }
   0x4   :  { %18 = vsyncpa [#allocation4 + $0x1], 0 }
   0x5   :  { %19 = vsyncpa [#allocation7], 0 }
   0x6   :  { %20 = vsyncpa [#allocation10], 0 }
   0x7   :  { %21 = vsyncpa [#allocation5], 0 }
   0x8   :  { %23 = vsyncpa [#allocation5 + $0x1], 0  ;;  %s1608_s11 = smov 0   ;;  %s1610_s12 = smov 0  }
   0x9   :  { %s1612_s13 = smov 0   ;;  %s1614_s14 = smov 0  }
   0xa LB: > { %1983 = sst [smem:[#allocation16_spill]] %s1530_s11  ;;  %s1629_s8 = sadd.s32 4294967295, %s1542_s14   ;;  %s1542_s14 = sphi %s1614_s14, %s2011_s14   ;;  %s1538_s13 = sphi %s1612_s13, %s2015_s13   ;;  %s1534_s12 = sphi %s1610_s12, %s2014_s12   ;;  %s1530_s11 = sphi %s1608_s11, %s2013_s11  }
   0xb   : > { %s1088_s15 = sadd.s32 4294967294, %s1542_s14   ;;  %s1633_s16 = sadd.s32 1, %s1542_s14  }
   0xc   : > { %1984 = sst [smem:[#allocation17_spill]] %s1633_s16  ;;  %s36_s17 = sadd.s32 1, %s1538_s13 }
   0xd   : > { %s33_s18 = ssub.s32 %s1542_s14, %s1633_s16  ;;  %p43_p0 = scmp.ne.s32.totalorder %s1538_s13, %s1534_s12 }
   0xe   : > { %p34_p1 = scmp.eq.s32.totalorder %s33_s18, 0  ;;  %p44_p2 = scmp.eq.s32.totalorder %s1542_s14, 0 }
   0xf   : > { %p49_p3 = scmp.ne.s32.totalorder %s1534_s12, %s1530_s11  ;;  %p1973_p4 = scmp.eq.s32.totalorder %s1629_s8, 0 }
  0x10   : > { %s1645_s19 = scalar_select %p34_p1, %s1538_s13, %s36_s17  }
  0x11   : > { %p1647_p5 = por %p44_p2, %p43_p0  ;;  %p1653_p6 = por %p1973_p4, %p49_p3 }
  0x12   : > { %1985 = sst [smem:[#allocation18_spill]] %s1645_s19  ;;  %p241_p7 = scmp.eq.s32.totalorder %s1629_s8, 1 }
  0x13   : > { %s1986_s20 = scalar_select %p1647_p5, 1, 0 }
  0x14   : > { %s1987_s21 = scalar_select %p1653_p6, 1, 0 }
  0x15   : > { %p247_p8 = scmp.eq.s32.totalorder %s1088_s15, 1  ;;  %p1089_p9 = scmp.ge.s32.totalorder %s1542_s14, 1 }
  0x16   : > { %p254_p10 = scmp.lt.s32.totalorder %s1542_s14, 3  ;;  %p1660_p11 = por %p241_p7, %p43_p0 }
  0x17   : > { %p1664_p12 = por %p247_p8, %p49_p3  ;;  %s1544_s25 = smov [#allocation6]  }
  0x18   : > { %s1988_s22 = scalar_select %p1660_p11, 1, 0 }
  0x19   : > { %s1989_s23 = scalar_select %p1664_p12, 1, 0 }
  0x1a   : > { %p1668_p13 = pnand %p1089_p9, %p254_p10  ;;  %s266_s26 = sshll.u32 %s1544_s25, 4  ;;  %s267_s26 = int_to_ptr.vmem [resolvable:$true] %s266_s26 }
  0x1b   : > { %1990 = sst [smem:[#allocation19_spill]] %s1989_s23  ;;  %s1545_s28 = smov [#allocation8]  }
  0x1c   : > { %s1991_s24 = scalar_select %p1668_p13, 1, 0 }
  0x1d   : > { %p1254_p1 = pneg %p1668_p13  ;;  %s279_s29 = sshll.u32 %s1545_s28, 4  ;;  %s280_s29 = int_to_ptr.vmem [resolvable:$true] %s279_s29 }
  0x1e   : > { %s1993_s1 = sld [smem:[#allocation20_spill]] }
  0x1f   : > { %p1676_p2 = pnand %p1254_p1, %p1973_p4 }
  0x21   : > { %p1690_p8 = pneg %p1676_p2 }
  0x24   : > { %s1354_s15 = scalar_lea.hbm %s1993_s1, 256 }
  0x25   : > { %p1355_p7 = scmp.ne.s32.totalorder %s1993_s1, %s1354_s15  ;;  %p1361_p1 = scmp.lt.u32.totalorder %s1354_s15, %s1993_s1 }
  0x27   : > { %p1357_p9 = pnand %p1690_p8, %p1355_p7 }
  0x29   : > { %p1358_p10 = pneg %p1357_p9 }
  0x2b   : > { %p1363_p0 = pnand %p1361_p1, %p1358_p10 }
  0x2d   : > { %1366 = shalt.err (!%p1363_p0)
}
  0x2e   : > { %s1367_s28 = scalar_lea.vmem %s267_s26, 256  ;;  %p1375_p11 = scmp.lt.s32.totalorder %s267_s26, %s267_s26 }
  0x2f   : > { %p1368_p4 = scmp.ne.s32.totalorder %s267_s26, %s1367_s28  ;;  %p1376_p6 = scmp.lt.s32.totalorder %s1367_s28, %s1367_s28 }
  0x31   : > { %p1370_p3 = pnand %p1368_p4, %p1690_p8  ;;  %p1377_p13 = por %p1376_p6, %p1375_p11 }
  0x33   : > { %p1371_p12 = pneg %p1370_p3 }
  0x35   : > { %p1378_p5 = pnand %p1377_p13, %p1371_p12 }
  0x37   : > { %1381 = shalt.err (!%p1378_p5)
}
  0x38   : > { %s1546_s30 = smov 64   ;;  %s1547_s16 = smov 4  }
  0x39   : > { %1257 = dma.hbm_to_vmem [thread:$0]  (!%p1676_p2), %s1993_s1, 256, %s267_s26, [#allocation7], %s1546_s30, %s1546_s30, %s1547_s16  }
  0x3a   : > { %p1995_p4 = scmp.ne.s32.totalorder %s1986_s20, 0  ;;  %p1996_p0 = scmp.lt.s32.totalorder %s1542_s14, 2 }
  0x3b   : > { %s1382_s28 = scalar_lea.hbm %s1963_s2, 256 }
  0x3c   : > { %p1713_p3 = pnand %p1996_p0, %p1995_p4  ;;  %p1383_p5 = scmp.ne.s32.totalorder %s1963_s2, %s1382_s28 }
  0x3d   : > { %p1389_p12 = scmp.lt.u32.totalorder %s1382_s28, %s1963_s2 }
  0x3e   : > { %s1997_s15 = scalar_select %p1713_p3, 1, 0 }
  0x3f   : > { %p1385_p6 = pnand %p1383_p5, %p1690_p8 }
  0x41   : > { %p1386_p11 = pneg %p1385_p6 }
  0x43   : > { %p1391_p13 = pnand %p1389_p12, %p1386_p11 }
  0x45   : > { %1394 = shalt.err (!%p1391_p13)
}
  0x46   : > { %s1395_s20 = scalar_lea.vmem %s280_s29, 256  ;;  %p1403_p1 = scmp.lt.s32.totalorder %s280_s29, %s280_s29 }
  0x47   : > { %p1396_p7 = scmp.ne.s32.totalorder %s280_s29, %s1395_s20  ;;  %p1404_p4 = scmp.lt.s32.totalorder %s1395_s20, %s1395_s20 }
  0x49   : > { %p1398_p9 = pnand %p1396_p7, %p1690_p8  ;;  %p1405_p0 = por %p1404_p4, %p1403_p1 }
  0x4b   : > { %p1399_p10 = pneg %p1398_p9 }
  0x4d   : > { %p1406_p3 = pnand %p1405_p0, %p1399_p10 }
  0x4f   : > { %1409 = shalt.err (!%p1406_p3)
}
  0x50   : > { %1260 = dma.hbm_to_vmem [thread:$0]  (!%p1676_p2), %s1963_s2, 256, %s280_s29, [#allocation7], %s1546_s30, %s1546_s30, %s1547_s16  }
  0x51   : > { %s1548_s10 = smov [#allocation9]   ;;  %s321_s18 = sand.u32 1, %s1538_s13  }
  0x52   : > { %s292_s17 = sshll.u32 %s1548_s10, 4  ;;  %s1410_s26 = scalar_lea.hbm %s1964_s3, 256  ;;  %s293_s17 = int_to_ptr.vmem [resolvable:$true] %s292_s17 }
  0x53   : > { %p1411_p3 = scmp.ne.s32.totalorder %s1964_s3, %s1410_s26  ;;  %p1417_p11 = scmp.lt.u32.totalorder %s1410_s26, %s1964_s3 }
  0x55   : > { %p1413_p5 = pnand %p1411_p3, %p1690_p8 }
  0x57   : > { %p1414_p6 = pneg %p1413_p5 }
  0x59   : > { %p1419_p12 = pnand %p1417_p11, %p1414_p6 }
  0x5b   : > { %1422 = shalt.err (!%p1419_p12)
}
  0x5c   : > { %s1423_s29 = scalar_lea.vmem %s293_s17, 256  ;;  %p1431_p10 = scmp.lt.s32.totalorder %s293_s17, %s293_s17 }
  0x5d   : > { %p1424_p13 = scmp.ne.s32.totalorder %s293_s17, %s1423_s29  ;;  %p1432_p1 = scmp.lt.s32.totalorder %s1423_s29, %s1423_s29 }
  0x5f   : > { %p1426_p7 = pnand %p1424_p13, %p1690_p8  ;;  %p1433_p4 = por %p1432_p1, %p1431_p10 }
  0x61   : > { %p1427_p9 = pneg %p1426_p7 }
  0x63   : > { %p1434_p0 = pnand %p1433_p4, %p1427_p9 }
  0x65   : > { %1437 = shalt.err (!%p1434_p0)
}
  0x66   : > { %1263 = dma.hbm_to_vmem [thread:$0]  (!%p1676_p2), %s1964_s3, 256, %s293_s17, [#allocation10], %s1546_s30, %s1546_s30, %s1547_s16  }
  0x67   : > { %s1094_s25 = sshll.u32 %s321_s18, 5  ;;  %s1095_s23 = sshll.u32 %s1542_s14, 6 }
  0x68   : > { %s1764_s19 = scalar_lea.hbm %s1961_s0, %s1095_s23  ;;  %s325_s27 = scalar_lea.vmem [#allocation3], %s1094_s25 }
  0x69   : > { %s331_s26 = sshll.u32 %s325_s27, 4  ;;  %s1768_s20 = scalar_lea.sflag [#allocation4], %s321_s18  ;;  %s1766_s26 = int_to_ptr.vmem [resolvable:$true] %s331_s26 }
  0x6a   : > { %s1438_s11 = scalar_lea.hbm %s1764_s19, 512  ;;  %p1998_p2 = scmp.ne.s32.totalorder %s1997_s15, 0 }
  0x6b   : > { %p1439_p8 = scmp.ne.s32.totalorder %s1764_s19, %s1438_s11  ;;  %s1443_s1 = scalar_lea.hbm %s1961_s0, 1024 }
  0x6c   : > { %p1440_p3 = pneg %p1998_p2  ;;  %p1444_p11 = scmp.lt.u32.totalorder %s1764_s19, %s1961_s0 }
  0x6d   : > { %p1445_p12 = scmp.lt.u32.totalorder %s1443_s1, %s1438_s11  ;;  %p1447_p7 = scmp.lt.u32.totalorder %s1438_s11, %s1764_s19 }
  0x6e   : > { %p1441_p5 = pnand %p1440_p3, %p1439_p8 }
  0x6f   : > { %p1446_p13 = por %p1445_p12, %p1444_p11 }
  0x70   : > { %p1442_p6 = pneg %p1441_p5 }
  0x71   : > { %p1448_p9 = por %p1447_p7, %p1446_p13 }
  0x73   : > { %p1449_p10 = pnand %p1448_p9, %p1442_p6 }
  0x75   : > { %1452 = shalt.err (!%p1449_p10)
}
  0x76   : > { %s1453_s18 = scalar_lea.vmem %s1766_s26, 512  ;;  %s1549_s25 = smov [#allocation3]  }
  0x77   : > { %p1454_p1 = scmp.ne.s32.totalorder %s1766_s26, %s1453_s18  ;;  %s1458_s10 = sshll.u32 %s1549_s25, 4  ;;  %s1459_s10 = int_to_ptr.vmem [resolvable:$false] %s1458_s10 }
  0x78   : > { %s1460_s28 = scalar_lea.vmem %s1459_s10, 1024  ;;  %p1461_p8 = scmp.lt.s32.totalorder %s1766_s26, %s1459_s10 }
  0x79   : > { %p1456_p4 = pnand %p1454_p1, %p1440_p3  ;;  %p1462_p5 = scmp.lt.s32.totalorder %s1460_s28, %s1453_s18 }
  0x7b   : > { %p1457_p0 = pneg %p1456_p4  ;;  %p1463_p11 = por %p1462_p5, %p1461_p8 }
  0x7d   : > { %p1464_p12 = pnand %p1463_p11, %p1457_p0 }
  0x7f   : > { %1467 = shalt.err (!%p1464_p12)
}
  0x80   : > { %s1550_s27 = smov 128   ;;  %p1999_p3 = scmp.ne.s32.totalorder %s1991_s24, 0 }
  0x81   : > { %1267 = dma.hbm_to_vmem [thread:$0]  (!%p1998_p2), %s1764_s19, 512, %s1766_s26, %s1768_s20, %s1550_s27, %s1546_s30, %s1547_s16  }
  0x82   : > { %343 = sbr.rel (%p1999_p3) target bundleno = 2169 (0x879), region = 56  ;;  %s1801_s11 = sand.u32 (!%p1999_p3), 1, %s1534_s12  }
  0x83   : > { %s1097_s17 = sshll.u32 (!%p1999_p3), %s1801_s11, 5  ;;  %s346_s29 = scalar_lea.sflag (!%p1999_p3), [#allocation4], %s1801_s11 }
  0x84   : > { %s1805_s1 = scalar_lea.vmem (!%p1999_p3), [#allocation3], %s1097_s17  ;;  %p2000_p6 = scmp.ne.s32.totalorder (!%p1999_p3), %s1987_s21, 0 }
  0x89   : > { %1513 = dma.done.wait (%p2000_p6), %s346_s29, 512  }
  0x8a   : > { %1515 = vsyncadd (%p2000_p6), %s346_s29, 4294966784  ;;  %p2001_p2 = scmp.eq.s32.totalorder %s1629_s8, 0 }
  0x8c   : > { %1517 = dma.done.wait (%p2001_p2), [#allocation7], 512   ;;  %p2002_p13 = pmov %p2001_p2 }
  0x8d   : > { %p2003_p7 = pmov %p2001_p2 }
  0x8e   : > { %1519 = vsyncadd (%p2002_p13), [#allocation7], 4294966784 }
  0x8f   : > { %1521 = dma.done.wait (%p2003_p7), [#allocation10], 256   ;;  %p2004_p9 = pmov %p2001_p2 }
  0x90   : > { %v1322_v1 = vld [vmem:[#allocation6] sm:$0xff]   ;;  %v1323_v2 = vld [vmem:[#allocation6 + $0x8] sm:$0xff]   ;;  %vm447_vm0 = vcmask 261120   ;;  %v1551_v6 = vmov 0.0   ;;  %vm1552_vm1 = vmmov 0   ;;  %v1328_v24 = vld [vmem:[%s1805_s1 + $0x10] sm:$0xff]  }
  0x91   : > { %1523 = vsyncadd (%p2004_p9), [#allocation10], 4294967040  ;;  %1162 = vmatprep.subr.bf16.mxu0 %v1322_v1  ;;  %v1324_v3 = vld [vmem:[%s1805_s1] sm:$0xff]   ;;  %v1325_v4 = vld [vmem:[%s1805_s1 + $0x8] sm:$0xff]   ;;  %1174 = vmatprep.subr.bf16.mxu1 %v1551_v6  ;;  %s1129_s9 = sshll.u32 %s1629_s8, 4  ;;  %s394_s23 = scalar_lea.vmem [#allocation11], %s1801_s11 }
  0x92   : > { %1163 = vmatpush3.bf16.msra.mxu0 %v1322_v1  ;;  %1166 = vmatprep.mubr.msk.bf16.mxu0 %vm447_vm0, %v1324_v3  ;;  %v1823_v5 = vld [vmem:[#allocation9] sm:$0xff]   ;;  %v1831_v7 = vld [vmem:[#allocation9 + $0x8] sm:$0xff]   ;;  %v1842_v8 = vld [vmem:[%s1965_s4] ss:$0 sm:$0xff]  ;;  %s993_s18 = sshll.u32 %s394_s23, 4  ;;  %vm978_vm2 = vcmask 57344   ;;  %s1919_s18 = int_to_ptr.vmem [resolvable:$true] %s993_s18 }
  0x93   : > { %1164 = vmatprep.subr.bf16.mxu0 %v1323_v2  ;;  %1175 = vmatpush3.bf16.msra.mxu1 %v1823_v5  ;;  %v1329_v25 = vld [vmem:[%s1805_s1 + $0x18] sm:$0xff]   ;;  %v1330_v62 = vld [vmem:[#allocation8] sm:$0xff]   ;;  %s2005_s28 = sld [smem:[#allocation21_spill]]  ;;  %s981_s17 = scalar_lea.sflag [#allocation5], %s1801_s11 }
  0x94   : > { %1176 = vmatprep.subr.bf16.mxu1 %v1551_v6  ;;  %1178 = vmatprep.mubr.msk.bf16.mxu1 %vm1552_vm1, %v1551_v6  ;;  %v1331_v63 = vld [vmem:[#allocation8 + $0x8] sm:$0xff]   ;;  %s1468_s29 = scalar_lea.vmem %s1919_s18, 16  ;;  %p2006_p1 = scmp.ne.s32.totalorder %s1988_s22, 0 }
  0x95   : > { %v1121_v0 = vld [vmem:[%s1805_s1 + $0x1c] sm:$0xf]  ;;  %p1469_p10 = scmp.ne.s32.totalorder %s1919_s18, %s1468_s29  ;;  %s1554_s8 = smov [#allocation11]  }
  0x96   : > { %1165 = vmatpush3.bf16.msra.mxu0 %v1323_v2  ;;  %s1472_s1 = sshll.u32 %s1554_s8, 4  ;;  %s1473_s1 = int_to_ptr.vmem [resolvable:$false] %s1472_s1 }
  0x97   : > { %1190 = vmatprep.subr.bf16.mxu0 %v1551_v6  ;;  %1177 = vmatpush3.bf16.msra.mxu1 %v1831_v7  ;;  %p1470_p4 = pnand %p1469_p10, %p2006_p1  ;;  %s1474_s21 = scalar_lea.vmem %s1473_s1, 32 }
  0x98   : > { %1182 = vmatprep.subr.bf16.mxu1 %v1551_v6  ;;  %p1475_p8 = scmp.lt.s32.totalorder %s1919_s18, %s1473_s1  ;;  %p1476_p5 = scmp.lt.s32.totalorder %s1474_s21, %s1468_s29 }
  0x99   : > { %1167 = vmatmul.mubr.msk.bf16.vlgmr.msra.gmra.mrb[0].mxu0 %vm447_vm0, %v1325_v4  ;;  %s1917_s27 = scalar_lea.hbm %s2005_s28, %s1129_s9  ;;  %p1471_p0 = pneg %p1470_p4 }
  0x9a   : > { %1191 = vmatpush3.bf16.msra.mxu0 %v1823_v5  ;;  %1170 = vmatprep.mubr.msk.bf16.mxu0 %vm447_vm0, %v1328_v24  ;;  %v1127_v24 = vld [vmem:[%s1968_s7] ss:$0 sm:$0xff]  ;;  %p1477_p11 = por %p1476_p5, %p1475_p8 }
  0x9b   : > { %1192 = vmatprep.subr.bf16.mxu0 %v1551_v6 }
  0x9c   : > { %p1478_p12 = pnand %p1477_p11, %p1471_p0 }
  0x9e   : > { %1193 = vmatpush3.bf16.msra.mxu0 %v1831_v7 }
  0x9f   : > { %1206 = vmatprep.subr.bf16.mxu0 %v1551_v6 }
  0xa1   : > { %1171 = vmatmul.mubr.msk.bf16.gmra.mrb[4].mxu0 %vm447_vm0, %v1329_v25  ;;  %v1126_v25 = vld [vmem:[%s1967_s6] ss:$0 sm:$0xff] }
  0xa2   : > { %1194 = vmatprep.mubr.msk.bf16.mxu0 %vm1552_vm1, %v1551_v6 }
 0x16c   : > { %v1168_v9 = vpop.f32.mrb[0].mxu0 }
 0x16d   : > { %v494_v10 = vpop.f32.mrb[1].mxu0  ;;  %v503_v26 = vadd.f32 %v1168_v9, %v1842_v8 }
 0x16e   : > { %v495_v11 = vadd.f32 %v1842_v8, %v494_v10  ;;  %v1169_v12 = vpop.f32.mrb[2].mxu0 }
 0x16f   : > { %v497_v13 = vpop.f32.mrb[3].mxu0  ;;  %v506_v38 = vadd.f32 %v1169_v12, %v1842_v8 }
 0x170   : > { %1332 = vtanh.f32 %v495_v11  ;;  %v498_v16 = vadd.f32 %v1842_v8, %v497_v13 }
 0x174   : > { %v1172_v34 = vpop.f32.mrb[4].mxu0 }
 0x175   : > { %v510_v35 = vpop.f32.mrb[5].mxu0  ;;  %v519_v1 = vadd.f32 %v1172_v34, %v1842_v8 }
 0x176   : > { %v1874_v36 = vpop.f32.mrb[6].mxu0  ;;  %v511_v46 = vadd.f32 %v1842_v8, %v510_v35 }
 0x177   : > { %v513_v37 = vpop.f32.mrb[7].mxu0 }
 0x178   : > { %v514_v54 = vadd.f32 %v1842_v8, %v513_v37 }
 0x17a   : > { %v1333_v14 = vpop.eup %1332 }
 0x17b   : > { %v530_v15 = vpack.c.bf16 %v1333_v14, %v1333_v14  ;;  %v1553_v14 = vmov 0  }
 0x17c   : > { %1321 = vset.pattern.permute.xlu0 %v1553_v14 }
 0x17d   : > { %1179 = vmatmul.mubr.msk.bf16.vlgmr.msra.gmra.mrb[0].mxu1 %vm447_vm0, %v530_v15  ;;  %v1122_v15 = vld [vmem:[%s1966_s5] ss:$0 sm:$0xff] }
 0x17e   : > { %1183 = vmatpush3.bf16.msra.mxu1 %v1823_v5  ;;  %1186 = vmatprep.mubr.msk.bf16.mxu1 %vm1552_vm1, %v1551_v6 }
 0x17f   : > { %1184 = vmatprep.subr.bf16.mxu1 %v1551_v6 }
 0x182   : > { %1185 = vmatpush3.bf16.msra.mxu1 %v1831_v7 }
 0x183   : > { %1198 = vmatprep.subr.bf16.mxu1 %v1551_v6 }
 0x250   : > { %v580_v17 = vpop.f32.mrb[0].mxu1 }
 0x251   : > { %v586_v18 = vadd.f32 %v580_v17, %v498_v16  ;;  %v1180_v19 = vpop.f32.mrb[1].mxu1  ;;  %v522_v17 = vadd.f32 %v1874_v36, %v1842_v8 }
 0x252   : > { %v583_v20 = vpop.f32.mrb[2].mxu1 }
 0x253   : > { %1334 = vtanh.f32 %v586_v18  ;;  %v1181_v21 = vpop.f32.mrb[3].mxu1 }
 0x25d   : > { %v1335_v22 = vpop.eup %1334 }
 0x25e   : > { %v588_v23 = vpack.c.bf16 %v1335_v22, %v1335_v22 }
 0x260   : > { %1187 = vmatmul.mubr.msk.bf16.vlgmr.msra.gmra.mrb[4].mxu1 %vm447_vm0, %v588_v23 }
 0x261   : > { %1199 = vmatpush3.bf16.msra.mxu1 %v1823_v5  ;;  %1202 = vmatprep.mubr.msk.bf16.mxu1 %vm1552_vm1, %v1551_v6 }
 0x262   : > { %1200 = vmatprep.subr.bf16.mxu1 %v1551_v6 }
 0x265   : > { %1201 = vmatpush3.bf16.msra.mxu1 %v1831_v7 }
 0x266   : > { %1214 = vmatprep.subr.bf16.mxu1 %v1551_v6 }
 0x333   : > { %v626_v27 = vpop.f32.mrb[4].mxu1 }
 0x334   : > { %v632_v28 = vadd.f32 %v626_v27, %v503_v26  ;;  %v1188_v29 = vpop.f32.mrb[5].mxu1 }
 0x335   : > { %v629_v30 = vpop.f32.mrb[6].mxu1 }
 0x336   : > { %1336 = vtanh.f32 %v632_v28  ;;  %v1189_v31 = vpop.f32.mrb[7].mxu1  ;;  %v953_v30 = vld [vmem:[#allocation2] sm:$0x1] }
 0x337   : > { %v959_v31 = vlaneseq }
 0x340   : > { %v1337_v32 = vpop.eup %1336 }
 0x341   : > { %v634_v33 = vpack.c.bf16 %v1337_v32, %v1337_v32  ;;  %v960_v32 = vshrl.u32 %v959_v31, 7 }
 0x343   : > { %1195 = vmatmul.mubr.msk.bf16.vlgmr.msra.gmra.mrb[8].mxu0 %vm447_vm0, %v634_v33  ;;  %v961_v34 = vsub.s32 0, %v960_v32 }
 0x344   : > { %1207 = vmatpush3.bf16.msra.mxu0 %v1823_v5  ;;  %1210 = vmatprep.mubr.msk.bf16.mxu0 %vm1552_vm1, %v1551_v6 }
 0x345   : > { %1208 = vmatprep.subr.bf16.mxu0 %v1551_v6 }
 0x348   : > { %1209 = vmatpush3.bf16.msra.mxu0 %v1831_v7 }
 0x349   : > { %1222 = vmatprep.subr.bf16.mxu0 %v1551_v6 }
 0x416   : > { %v672_v39 = vpop.f32.mrb[8].mxu0 }
 0x417   : > { %v678_v40 = vadd.f32 %v672_v39, %v506_v38  ;;  %v1196_v41 = vpop.f32.mrb[9].mxu0 }
 0x418   : > { %v675_v42 = vpop.f32.mrb[10].mxu0  ;;  %v972_v41 = vand.u32 127, %v959_v31 }
 0x419   : > { %1338 = vtanh.f32 %v678_v40  ;;  %v1197_v43 = vpop.f32.mrb[11].mxu0 }
 0x41a   : > { %v975_v42 = vsub.s32 %v972_v41, %v960_v32 }
 0x423   : > { %v1339_v44 = vpop.eup %1338 }
 0x424   : > { %v680_v45 = vpack.c.bf16 %v1339_v44, %v1339_v44 }
 0x426   : > { %1203 = vmatmul.mubr.msk.bf16.vlgmr.msra.gmra.mrb[8].mxu1 %vm447_vm0, %v680_v45 }
 0x427   : > { %1215 = vmatpush3.bf16.msra.mxu1 %v1823_v5  ;;  %1218 = vmatprep.mubr.msk.bf16.mxu1 %vm1552_vm1, %v1551_v6 }
 0x428   : > { %1216 = vmatprep.subr.bf16.mxu1 %v1551_v6 }
 0x42b   : > { %1217 = vmatpush3.bf16.msra.mxu1 %v1831_v7 }
 0x42c   : > { %1230 = vmatprep.subr.bf16.mxu1 %v1551_v6 }
 0x4f9   : > { %v718_v47 = vpop.f32.mrb[8].mxu1 }
 0x4fa   : > { %v724_v48 = vadd.f32 %v718_v47, %v511_v46  ;;  %v1204_v49 = vpop.f32.mrb[9].mxu1 }
 0x4fb   : > { %v721_v50 = vpop.f32.mrb[10].mxu1 }
 0x4fc   : > { %1340 = vtanh.f32 %v724_v48  ;;  %v1205_v51 = vpop.f32.mrb[11].mxu1 }
 0x506   : > { %v1341_v52 = vpop.eup %1340 }
 0x507   : > { %v726_v53 = vpack.c.bf16 %v1341_v52, %v1341_v52 }
 0x509   : > { %1211 = vmatmul.mubr.msk.bf16.vlgmr.msra.gmra.mrb[12].mxu0 %vm447_vm0, %v726_v53 }
 0x50a   : > { %1223 = vmatpush3.bf16.msra.mxu0 %v1823_v5  ;;  %1226 = vmatprep.mubr.msk.bf16.mxu0 %vm1552_vm1, %v1551_v6 }
 0x50b   : > { %1224 = vmatprep.subr.bf16.mxu0 %v1551_v6 }
 0x50e   : > { %1225 = vmatpush3.bf16.msra.mxu0 %v1831_v7 }
 0x5dc   : > { %v764_v55 = vpop.f32.mrb[12].mxu0 }
 0x5dd   : > { %v770_v56 = vadd.f32 %v764_v55, %v514_v54  ;;  %v1212_v57 = vpop.f32.mrb[13].mxu0 }
 0x5de   : > { %v767_v58 = vpop.f32.mrb[14].mxu0 }
 0x5df   : > { %1342 = vtanh.f32 %v770_v56  ;;  %v1213_v59 = vpop.f32.mrb[15].mxu0 }
 0x5e9   : > { %v1343_v60 = vpop.eup %1342 }
 0x5ea   : > { %v772_v61 = vpack.c.bf16 %v1343_v60, %v1343_v60 }
 0x5ec   : > { %1219 = vmatmul.mubr.msk.bf16.vlgmr.msra.gmra.mrb[12].mxu1 %vm447_vm0, %v772_v61 }
 0x5ed   : > { %1234 = vmatprep.mubr.msk.bf16.mxu1 %vm1552_vm1, %v1551_v6  ;;  %1231 = vmatpush3.bf16.msra.mxu1 %v1330_v62 }
 0x5ee   : > { %1232 = vmatprep.subr.bf16.mxu1 %v1551_v6 }
 0x5f1   : > { %1233 = vmatpush3.bf16.msra.mxu1 %v1331_v63 }
 0x5f4   : > { %1235 = vmatmul.mubr.msk.bf16.vlgmr.msra.gmra.mrb[16].mxu1 %vm447_vm0, %v1121_v0 }
 0x6bf   : > { %v810_v2 = vpop.f32.mrb[12].mxu1 }
 0x6c0   : > { %v816_v3 = vadd.f32 %v810_v2, %v519_v1  ;;  %v1220_v4 = vpop.f32.mrb[13].mxu1 }
 0x6c1   : > { %v813_v5 = vpop.f32.mrb[14].mxu1 }
 0x6c2   : > { %1344 = vtanh.f32 %v816_v3  ;;  %v1221_v7 = vpop.f32.mrb[15].mxu1 }
 0x6c7   : > { %v926_v11 = vpop.f32.mrb[16].mxu1 }
 0x6c8   : > { %v1236_v12 = vpop.f32.mrb[17].mxu1  ;;  %v927_v16 = vadd.f32 %v1122_v15, %v926_v11 }
 0x6c9   : > { %v929_v6 = vpop.f32.mrb[18].mxu1 }
 0x6ca   : > { %v1237_v13 = vpop.f32.mrb[19].mxu1  ;;  %1346 = vtanh.f32 %v927_v16 }
 0x6cc   : > { %v1345_v9 = vpop.eup %1344 }
 0x6cd   : > { %v818_v10 = vpack.c.bf16 %v1345_v9, %v1345_v9 }
 0x6cf   : > { %1227 = vmatmul.mubr.msk.bf16.vlgmr.msra.gmra.mrb[16].mxu0 %vm447_vm0, %v818_v10 }
 0x6d4   : > { %v1347_v23 = vpop.eup %1346 }
 0x6d5   : > { %v948_v26 = vmul.f32 %v1347_v23, %v1127_v24 }
 0x7a2   : > { %v856_v18 = vpop.f32.mrb[16].mxu0 }
 0x7a3   : > { %v862_v19 = vadd.f32 %v856_v18, %v522_v17  ;;  %v1228_v20 = vpop.f32.mrb[17].mxu0 }
 0x7a4   : > { %v859_v21 = vpop.f32.mrb[18].mxu0 }
 0x7a5   : > { %1348 = vtanh.f32 %v862_v19  ;;  %v1229_v22 = vpop.f32.mrb[19].mxu0 }
 0x7af   : > { %v1349_v27 = vpop.eup %1348 }
 0x7b0   : > { %v940_v28 = vmul.f32 %v1349_v27, %v1126_v25 }
 0x7b2   : > { %v949_v8 = vadd.f32 %v948_v26, %v940_v28 }
 0x7b4   : > { %v950_v29 = vsel %vm447_vm0, %v949_v8, 0.0 }
 0x7b5   : > { %951 = vadd.xlane.f32.xlu0 %v950_v29 }
 0x7cb   : > { %956 = vperm.xlu0 %1321, %v953_v30  }
 0x842   : > { %v952_v33 = vpop.xlane.xlu0 %951 }
 0x84a   : > { %v957_v35 = vpop.permute.xlu0 %956 }
 0x84b   : > { %v962_v36 = vrot.slane %v957_v35, %v961_v34 }
 0x84d   : > { %v963_v37 = vadd.f32 %v962_v36, %v952_v33 }
 0x84f   : > { %v1128_v38 = vmul.f32 -1.442695, %v963_v37 }
 0x851   : > { %1350 = vpow2.f32 %v1128_v38 }
 0x85b   : > { %v1351_v39 = vpop.eup %1350 }
 0x85c   : > { %v967_v40 = vadd.f32 1.0, %v1351_v39 }
 0x85e   : > { %1352 = vrcp.f32 %v967_v40 }
 0x868   : > { %v1353_v43 = vpop.eup %1352 }
 0x869   : > { %v976_v44 = vrot.slane %v1353_v43, %v975_v42 }
 0x86b   : > { %979 = vst.msk [vmem:[%s394_s23] sm:$0x1] %vm978_vm2, %v976_v44 }
 0x86c   : > { %1481 = shalt.err (!%p1478_p12)
}
 0x86d   : > { %s1482_s11 = scalar_lea.hbm %s1917_s27, 16  ;;  %s1486_s16 = scalar_lea.hbm %s2005_s28, 32 }
 0x86e   : > { %p1483_p3 = scmp.ne.s32.totalorder %s1917_s27, %s1482_s11  ;;  %p1487_p13 = scmp.lt.u32.totalorder %s1917_s27, %s2005_s28 }
 0x86f   : > { %p1488_p7 = scmp.lt.u32.totalorder %s1486_s16, %s1482_s11  ;;  %p1490_p10 = scmp.lt.u32.totalorder %s1482_s11, %s1917_s27 }
 0x870   : > { %p1484_p6 = pnand %p1483_p3, %p2006_p1 }
 0x871   : > { %p1489_p9 = por %p1488_p7, %p1487_p13 }
 0x872   : > { %p1485_p2 = pneg %p1484_p6 }
 0x873   : > { %p1491_p4 = por %p1490_p10, %p1489_p9 }
 0x875   : > { %p1492_p0 = pnand %p1491_p4, %p1485_p2 }
 0x877   : > { %1495 = shalt.err (!%p1492_p0)
}
 0x878   : > { %1252 = dma.vmem_to_hbm [thread:$0]  (%p2006_p1), %s1919_s18, 16, %s1917_s27, %s981_s17  }
 0x879 PF: > { %s2007_s26 = sld [smem:[#allocation16_spill]]  ;;  %s2008_s20 = sld [smem:[#allocation19_spill]] }
 0x87a   : > { %p2010_p5 = scmp.ge.s32.totalorder %s1542_s14, 2 }
 0x87f   : > { %s1005_s9 = sand.u32 1, %s2007_s26   ;;  %p2009_p8 = scmp.ne.s32.totalorder %s2008_s20, 0 }
 0x880   : > { %s1006_s23 = scalar_lea.sflag [#allocation5], %s1005_s9 }
 0x881   : > { %p1269_p11 = pnand %p2010_p5, %p2009_p8 }
 0x883   : > { %1525 = dma.done.wait (!%p1269_p11), %s1006_s23, 16  }
 0x884   : > { %1527 = vsyncadd (!%p1269_p11), %s1006_s23, 4294967280  ;;  %s2011_s14 = sld [smem:[#allocation17_spill]]  ;;  %s2012_s25 = sld [smem:[#allocation18_spill]] }
 0x885   : > { %s2013_s11 = smov %s1534_s12  ;;  %s2014_s12 = smov %s1538_s13 }
 0x88a   : > { %p26_p12 = scmp.ge.s32.totalorder %s2011_s14, 4   ;;  %s2015_s13 = smov %s2012_s25 }
 0x88c   :  { %28 = sbr.rel (!%p26_p12) target bundleno = 10 (0xa), region = 114 }
 0x893   :  { %1010 = vsyncpa [#allocation4], 1 }
 0x894   :  { %1012 = vsyncpa [#allocation4 + $0x1], 1 }
 0x895   :  { %1013 = vsyncpa [#allocation7], 1 }
 0x896   :  { %1014 = vsyncpa [#allocation10], 1 }
 0x897   :  { %1015 = vsyncpa [#allocation5], 1 }
 0x898   :  { %1017 = vsyncpa [#allocation5 + $0x1], 1 }

</bundles_post_ra>
